<compile_context>
chip_gen: v7x
topology: tpu7x:2x2x1
jax: 0.10.0
libtpu: 0.0.40
codegen_flags: <defaults>
</compile_context>

<pallas_src>
import functools

import jax
import jax.numpy as jnp
from jax.experimental import pallas as pl
from jax.experimental.pallas import tpu as pltpu

# ------------------------------------------------------------------
# Constant distance structures (same values as the PyTorch module).
# ------------------------------------------------------------------
AREA_DISTANCE_MATRIX = jnp.array(
    [[0, 1, 2, 2, 2, 2],
     [1, 0, 1, 1, 1, 1],
     [2, 1, 0, 1, 3, 3],
     [2, 1, 1, 0, 3, 3],
     [2, 1, 3, 3, 0, 1],
     [2, 1, 3, 3, 1, 0]], dtype=jnp.float32)

NODE_DISTANCE_MATRIX = jnp.array(
    [[0, 1, 2, 2, 1, 2, 2, 2.5, 3.5, 4, 5.5, 5, 4, 2.5, 3.5, 4, 5, 3.5, 4.5, 3.5, 2.5, 2.5],
     [1, 0, 1, 3, 2, 3, 1, 1.5, 2.5, 3, 4.5, 4, 3, 1.5, 4.5, 5, 6, 4.5, 5.5, 4.5, 3.5, 3.5],
     [2, 1, 0, 2, 3, 4, 2, 2.5, 3.5, 4, 5.5, 3, 2, 0.5, 3.5, 4, 5, 3.5, 4.5, 5.5, 4.5, 2.5],
     [2, 3, 2, 0, 1, 2, 4, 4.5, 5.5, 6, 7.5, 5, 4, 2.5, 1.5, 2, 3, 1.5, 2.5, 3.5, 2.5, 0.5],
     [1, 2, 3, 1, 0, 1, 3, 3.5, 4.5, 5, 6.5, 6, 5, 3.5, 2.5, 3, 4, 2.5, 3.5, 2.5, 1.5, 1.5],
     [2, 3, 4, 2, 1, 0, 2, 2.5, 3.5, 4, 5.5, 7, 6, 4.5, 3.5, 4, 5, 3.5, 2.5, 1.5, 0.5, 2.5],
     [2, 1, 2, 4, 3, 2, 0, 0.5, 1.5, 2, 3.5, 5, 4, 2.5, 5.5, 6, 7, 5.5, 4.5, 3.5, 2.5, 4.5],
     [2.5, 1.5, 2.5, 4.5, 3.5, 2.5, 0.5, 0, 1, 1.5, 3, 3.5, 4.5, 3, 6, 6.5, 7.5, 6, 5, 4, 3, 5],
     [3.5, 2.5, 3.5, 5.5, 4.5, 3.5, 1.5, 1, 0, 0.5, 2, 2.5, 3.5, 4, 7, 7.5, 8.5, 7, 6, 5, 4, 6],
     [4, 3, 4, 6, 5, 4, 2, 1.5, 0.5, 0, 1.5, 2, 3, 4.5, 7.5, 8, 9, 7.5, 6.5, 5.5, 4.5, 6.5],
     [5.5, 4.5, 5.5, 7.5, 6.5, 5.5, 3.5, 3, 2, 1.5, 0, 0.5, 1.5, 3, 7, 7.5, 8.5, 7, 8, 7, 6, 6.5],
     [5, 4, 3, 5, 6, 7, 5, 3.5, 2.5, 2, 0.5, 0, 1, 2.5, 6.5, 7, 8, 6.5, 7.5, 7.5, 6.5, 5.5],
     [4, 3, 2, 4, 5, 6, 4, 4.5, 3.5, 3, 1.5, 1, 0, 1.5, 5.5, 6, 7, 5.5, 6.5, 7.5, 7, 4.5],
     [2.5, 1.5, 0.5, 2.5, 3.5, 4.5, 2.5, 3, 4, 4.5, 3, 2.5, 1.5, 0, 4, 4.5, 5.5, 4, 5, 6, 5.5, 3],
     [3.5, 4.5, 3.5, 1.5, 2.5, 3.5, 5.5, 6, 7, 7.5, 7, 6.5, 5.5, 4, 0, 0.5, 1.5, 0.5, 1.5, 2.5, 3.5, 1],
     [4, 5, 4, 2, 3, 4, 6, 6.5, 7.5, 8, 7.5, 7, 6, 4.5, 0.5, 0, 1, 1, 2, 3, 4, 1.5],
     [5, 6, 5, 3, 4, 5, 7, 7.5, 8.5, 9, 8.5, 8, 7, 5.5, 1.5, 1, 0, 1.5, 2.5, 3.5, 4.5, 2.5],
     [3.5, 4.5, 3.5, 1.5, 2.5, 3.5, 5.5, 6, 7, 7.5, 7, 6.5, 5.5, 4, 0.5, 1, 1.5, 0, 1, 2, 3, 1],
     [4.5, 5.5, 4.5, 2.5, 3.5, 2.5, 4.5, 5, 6, 6.5, 8, 7.5, 6.5, 5, 1.5, 2, 2.5, 1, 0, 1, 2, 2],
     [3.5, 4.5, 5.5, 3.5, 2.5, 1.5, 3.5, 4, 5, 5.5, 7, 7.5, 7.5, 6, 2.5, 3, 3.5, 2, 1, 0, 1, 3],
     [2.5, 3.5, 4.5, 2.5, 1.5, 0.5, 2.5, 3, 4, 4.5, 6, 6.5, 7, 5.5, 3.5, 4, 4.5, 3, 2, 1, 0, 3],
     [2.5, 3.5, 2.5, 0.5, 1.5, 2.5, 4.5, 5, 6, 6.5, 6.5, 5.5, 4.5, 3, 1, 1.5, 2.5, 1, 2, 3, 3, 0]],
    dtype=jnp.float32)

NODE_TO_AREA = jnp.array(
    [0, 0, 0, 0, 0, 0, 0, 1, 2, 2, 3, 3, 3, 1, 4, 4, 4, 5, 5, 5, 1, 1],
    dtype=jnp.int32)

NUM_CLASSES = 22
MAX_TILE_B = 4096                 # rows per grid step (multiple of 8)
VMEM_LIMIT_BYTES = 48 * 1024 * 1024   # budget for 128-lane-padded f32 temporaries; < v7x 64 MiB


# ------------------------------------------------------------------
# Kernel: per-tile fused softmax + CE + combined distance penalty.
# Input stream per tile: [tile_b, 23] — lanes 0..21 are logits, lane 22 is the
# target id stored in the logits dtype.  d_ext [22, 23] is resident:
# d_ext[:, :22] = (alpha*node + beta*area)^T, d_ext[:, 22] = 1.
# ------------------------------------------------------------------
def _loss_kernel(xt_ref, dext_ref, out_ref, acc_ref, *, batch_size, tile_b):
    i = pl.program_id(0)

    @pl.when(i == 0)
    def _():
        acc_ref[...] = jnp.zeros_like(acc_ref)

    xt = xt_ref[...].astype(jnp.float32)                            # [tile_b, 23]
    x = xt[:, :NUM_CLASSES]                                         # [tile_b, 22] logits
    t = xt[:, NUM_CLASSES:NUM_CLASSES + 1].astype(jnp.int32)        # [tile_b, 1] targets
    d_ext = dext_ref[...]                                           # [22, 23]

    # Numerically-stable softmax pieces along the class (lane) axis.
    row_max = jnp.max(x, axis=-1, keepdims=True)                    # lane reduce #1 (XLU)
    shifted = x - row_max
    ex = jnp.exp(shifted)                                           # EUP

    # One MXU matmul: cols 0..21 = sum_c ex[c] * D[k, c] (penalty numerators for
    # every candidate target k), col 22 = sum_exp (ones column) -- the exp-sum
    # reduction rides on the MXU instead of the XLU.
    g = jnp.dot(ex, d_ext, preferred_element_type=jnp.float32)      # [tile_b, 23]
    sum_ex = g[:, NUM_CLASSES:NUM_CLASSES + 1]                      # [tile_b, 1]
    pen_num = g[:, :NUM_CLASSES]                                    # [tile_b, 22]
    # Exact reciprocal keeps the f32-reference tolerance; approx=True is a further
    # (EUP-slot) option if ~1e-3 relative error is acceptable.
    inv_sum = pl.reciprocal(sum_ex, approx=False)
    log_sum = jnp.log(sum_ex)

    # One-hot built in-kernel from the appended target lane.
    cls = jax.lax.broadcasted_iota(jnp.int32, (tile_b, NUM_CLASSES), 1)
    oh = (cls == t).astype(jnp.float32)

    # loss_row = [logsumexp - shifted[target]] + pen_num[target] / sum_exp,
    # folded into ONE one-hot-weighted lane reduce (XLU reduce #2).
    loss_rows = log_sum + jnp.sum(oh * (pen_num * inv_sum - shifted),
                                  axis=-1, keepdims=True)           # [tile_b, 1]

    # Mask tail rows of the (possibly partial) last block.  jnp.where (not multiply)
    # so garbage rows in the edge block cannot inject NaN/Inf into the accumulator.
    row = jax.lax.broadcasted_iota(jnp.int32, (tile_b, 1), 0)
    valid = (i * tile_b + row) < batch_size
    acc_ref[...] += jnp.sum(jnp.where(valid, loss_rows, 0.0), keepdims=True)

    # Finalize: write the batch-mean loss into element [0, 0] of a lane-dense
    # (8, 128) output block (everything else zero).
    @pl.when(i == pl.num_programs(0) - 1)
    def _():
        r0 = jax.lax.broadcasted_iota(jnp.int32, (8, 128), 0) == 0
        c0 = jax.lax.broadcasted_iota(jnp.int32, (8, 128), 1) == 0
        out_ref[...] = jnp.where(r0 & c0, acc_ref[...] * (1.0 / batch_size), 0.0)


def _tiling(b):
    if b <= MAX_TILE_B:
        return b, 1                      # one block spanning the batch (block dim == full dim)
    return MAX_TILE_B, pl.cdiv(b, MAX_TILE_B)


# ------------------------------------------------------------------
# Wrapper (jitted): tiny glue (combined distance matrix, target-lane append) in
# JAX, hot path in Pallas.
# ------------------------------------------------------------------
@jax.jit
def distance_penalty_loss(logits, targets, alpha=1.0, beta=1.0):
    """logits: [B, 22] (f32 or bf16), targets: [B] int. Returns scalar f32 loss."""
    b, c = logits.shape
    assert c == NUM_CLASSES
    tile_b, num_tiles = _tiling(b)

    # alpha/beta folded into one [22, 22] combined distance matrix; extended with a
    # ones column so a single matmul also yields sum_exp.
    area_exp = AREA_DISTANCE_MATRIX[NODE_TO_AREA][:, NODE_TO_AREA]          # [22, 22]
    d_comb = (alpha * NODE_DISTANCE_MATRIX + beta * area_exp).astype(jnp.float32)
    d_ext = jnp.concatenate(
        [d_comb.T, jnp.ones((NUM_CLASSES, 1), jnp.float32)], axis=1)        # [22, 23]

    # Append the target id as lane 22 of the logits stream: single [B, 23] input,
    # no 128-lane-padded int32 targets buffer.  (0..21 is exact in f32 and bf16.)
    xt = jnp.concatenate(
        [logits, targets.astype(logits.dtype).reshape(b, 1)], axis=1)       # [B, 23]

    kernel = functools.partial(_loss_kernel, batch_size=b, tile_b=tile_b)

    # TODO(synk): on v7x, an outer CORE_PARALLEL grid axis (2-way batch split) could
    # engage the second TensorCore; kept 1-D here since it cannot be verified in-script.
    out = pl.pallas_call(
        kernel,
        out_shape=jax.ShapeDtypeStruct((8, 128), jnp.float32),
        grid=(num_tiles,),
        in_specs=[
            pl.BlockSpec((tile_b, NUM_CLASSES + 1), lambda i: (i, 0)),       # logits+target
            pl.BlockSpec((NUM_CLASSES, NUM_CLASSES + 1), lambda i: (0, 0)),  # resident d_ext
        ],
        out_specs=pl.BlockSpec((8, 128), lambda i: (0, 0)),
        scratch_shapes=[pltpu.VMEM((1, 1), jnp.float32)],
        compiler_params=pltpu.CompilerParams(
            dimension_semantics=("arbitrary",),
            vmem_limit_bytes=VMEM_LIMIT_BYTES),
    )(xt, d_ext)

    return out[0, 0]


# Pure-JAX reference (mirrors the PyTorch forward) for a sanity check.
def _reference_loss(logits, targets, alpha=1.0, beta=1.0):
    logits = logits.astype(jnp.float32)
    logp = jax.nn.log_softmax(logits, axis=1)
    ce = -jnp.mean(jnp.take_along_axis(logp, targets[:, None], axis=1))
    probs = jax.nn.softmax(logits, axis=1)
    node_rows = NODE_DISTANCE_MATRIX[targets]
    area_rows = AREA_DISTANCE_MATRIX[NODE_TO_AREA[targets]][:, NODE_TO_AREA]
    node_pen = jnp.mean(jnp.sum(probs * node_rows, axis=1))
    area_pen = jnp.mean(jnp.sum(probs * area_rows, axis=1))
    return ce + alpha * node_pen + beta * area_pen


if __name__ == "__main__":
    key = jax.random.PRNGKey(0)
    k1, k2, k3, k4, k5, k6 = jax.random.split(key, 6)

    # Small demo shape (matches the module's batch_size = 16, 22 classes).
    B = 16
    logits = jax.random.normal(k1, (B, NUM_CLASSES), dtype=jnp.float32)
    targets = jax.random.randint(k2, (B,), 0, NUM_CLASSES, dtype=jnp.int32)
    loss = jax.block_until_ready(distance_penalty_loss(logits, targets, 1.0, 1.0))
    ref = _reference_loss(logits, targets, 1.0, 1.0)
    assert jnp.allclose(loss, ref, rtol=1e-4, atol=1e-4), (loss, ref)

    # Ragged batch that is not a multiple of 8: single full-extent block, no padding,
    # non-default alpha/beta.
    B2 = 3000
    logits2 = jax.random.normal(k3, (B2, NUM_CLASSES), dtype=jnp.float32)
    targets2 = jax.random.randint(k4, (B2,), 0, NUM_CLASSES, dtype=jnp.int32)
    loss2 = jax.block_until_ready(
        distance_penalty_loss(logits2, targets2, alpha=0.5, beta=2.0))
    ref2 = _reference_loss(logits2, targets2, alpha=0.5, beta=2.0)
    assert jnp.allclose(loss2, ref2, rtol=1e-4, atol=1e-4), (loss2, ref2)

    # Multi-tile grid with a partial (masked) edge block, bf16 logits pass-through.
    B3 = 9500
    logits3 = jax.random.normal(k5, (B3, NUM_CLASSES), dtype=jnp.float32).astype(jnp.bfloat16)
    targets3 = jax.random.randint(k6, (B3,), 0, NUM_CLASSES, dtype=jnp.int32)
    loss3 = jax.block_until_ready(
        distance_penalty_loss(logits3, targets3, alpha=1.5, beta=0.25))
    ref3 = _reference_loss(logits3, targets3, alpha=1.5, beta=0.25)
    assert jnp.allclose(loss3, ref3, rtol=1e-4, atol=1e-4), (loss3, ref3)

    print("KERNEL_OK")
</pallas_src>

<mosaic_0001>
module attributes {stable_mosaic.version = 11 : i64} {
  func.func @_loss_kernel(%arg0: i32, %arg1: memref<16x23xf32, #tpu.memory_space<vmem>>, %arg2: memref<22x23xf32, #tpu.memory_space<vmem>>, %arg3: memref<8x128xf32, #tpu.memory_space<vmem>>, %arg4: memref<1x1xf32, #tpu.memory_space<vmem>>) attributes {dimension_semantics = [#tpu.dimension_semantics<arbitrary>], iteration_bounds = array<i64: 1>, scalar_prefetch = 0 : i64, scratch_operands = 1 : i64, tpu.core_type = #tpu.core_type<tc>, window_params = [{transform_indices = @transform_0, window_bounds = array<i64: 16, 23>}, {pipeline_mode = #tpu.pipeline_mode<synchronous>, transform_indices = @transform_1, window_bounds = array<i64: 22, 23>}, {pipeline_mode = #tpu.pipeline_mode<synchronous>, transform_indices = @transform_2, window_bounds = array<i64: 8, 128>}]} {
    %c0_i32 = arith.constant 0 : i32
    %0 = arith.cmpi eq, %arg0, %c0_i32 : i32
    %1 = arith.extui %0 : i1 to i32
    %c0_i32_0 = arith.constant 0 : i32
    %2 = arith.cmpi ne, %1, %c0_i32_0 : i32
    scf.if %2 {
      %cst_15 = arith.constant 0.000000e+00 : f32
      %49 = vector.broadcast %cst_15 : f32 to vector<1x1xf32>
      %c0_16 = arith.constant 0 : index
      %c0_17 = arith.constant 0 : index
      %50 = vector.load %arg4[%c0_16, %c0_17] : memref<1x1xf32, #tpu.memory_space<vmem>>, vector<1x1xf32>
      tpu.vector_store %arg4[%c0_16, %c0_17], %49 {strides = array<i32>} : memref<1x1xf32, #tpu.memory_space<vmem>>, vector<1x1xf32>,
    } else {
    }
    %c0 = arith.constant 0 : index
    %c0_1 = arith.constant 0 : index
    %3 = vector.load %arg1[%c0, %c0_1] : memref<16x23xf32, #tpu.memory_space<vmem>>, vector<16x23xf32>
    %4 = vector.extract_strided_slice %3 {offsets = [0, 0], sizes = [16, 22], strides = [1, 1]} : vector<16x23xf32> to vector<16x22xf32>
    %5 = vector.extract_strided_slice %3 {offsets = [0, 22], sizes = [16, 1], strides = [1, 1]} : vector<16x23xf32> to vector<16x1xf32>
    %6 = arith.fptosi %5 : vector<16x1xf32> to vector<16x1xi32>
    %c0_2 = arith.constant 0 : index
    %c0_3 = arith.constant 0 : index
    %7 = vector.load %arg2[%c0_2, %c0_3] : memref<22x23xf32, #tpu.memory_space<vmem>>, vector<22x23xf32>
    %cst = arith.constant dense<0xFF800000> : vector<16xf32>
    %8 = vector.multi_reduction <maximumf>, %4, %cst [1] : vector<16x22xf32> to vector<16xf32>
    %9 = vector.shape_cast %8 : vector<16xf32> to vector<16x1xf32>
    %10 = vector.broadcast %9 : vector<16x1xf32> to vector<16x22xf32>
    %11 = arith.subf %4, %10 : vector<16x22xf32>
    %12 = math.exp %11 : vector<16x22xf32>
    %cst_4 = arith.constant dense<0.000000e+00> : vector<16x23xf32>
    %13 = tpu.matmul %12, %7, %cst_4 {dimension_numbers = #tpu.dot_dimension_numbers<[1], [0], [0], [1], [0, 0, 1, 1], [], []>} : vector<16x22xf32>, vector<22x23xf32>, vector<16x23xf32> -> vector<16x23xf32>
    %14 = vector.extract_strided_slice %13 {offsets = [0, 22], sizes = [16, 1], strides = [1, 1]} : vector<16x23xf32> to vector<16x1xf32>
    %15 = vector.extract_strided_slice %13 {offsets = [0, 0], sizes = [16, 22], strides = [1, 1]} : vector<16x23xf32> to vector<16x22xf32>
    %16 = tpu.reciprocal %14 : vector<16x1xf32> -> vector<16x1xf32>
    %17 = math.log %14 : vector<16x1xf32>
    %18 = tpu.iota {dimensions = array<i32: 1>} : vector<16x22xi32>
    %19 = vector.broadcast %6 : vector<16x1xi32> to vector<16x22xi32>
    %20 = arith.cmpi eq, %18, %19 : vector<16x22xi32>
    %21 = arith.extui %20 : vector<16x22xi1> to vector<16x22xi32>
    %22 = arith.sitofp %21 : vector<16x22xi32> to vector<16x22xf32>
    %23 = vector.broadcast %16 : vector<16x1xf32> to vector<16x22xf32>
    %24 = arith.mulf %15, %23 : vector<16x22xf32>
    %25 = arith.subf %24, %11 : vector<16x22xf32>
    %26 = arith.mulf %22, %25 : vector<16x22xf32>
    %cst_5 = arith.constant dense<0.000000e+00> : vector<16xf32>
    %27 = vector.multi_reduction <add>, %26, %cst_5 [1] : vector<16x22xf32> to vector<16xf32>
    %28 = vector.shape_cast %27 : vector<16xf32> to vector<16x1xf32>
    %29 = arith.addf %17, %28 : vector<16x1xf32>
    %30 = tpu.iota {dimensions = array<i32: 0>} : vector<16x1xi32>
    %c16_i32 = arith.constant 16 : i32
    %31 = arith.muli %arg0, %c16_i32 : i32
    %32 = vector.broadcast %31 : i32 to vector<16x1xi32>
    %33 = arith.addi %32, %30 : vector<16x1xi32>
    %c16_i32_6 = arith.constant 16 : i32
    %34 = vector.broadcast %c16_i32_6 : i32 to vector<16x1xi32>
    %35 = arith.cmpi slt, %33, %34 : vector<16x1xi32>
    %c0_7 = arith.constant 0 : index
    %c0_8 = arith.constant 0 : index
    %36 = vector.load %arg4[%c0_7, %c0_8] : memref<1x1xf32, #tpu.memory_space<vmem>>, vector<1x1xf32>
    %cst_9 = arith.constant 0.000000e+00 : f32
    %37 = vector.broadcast %cst_9 : f32 to vector<16x1xf32>
    %38 = arith.select %35, %29, %37 : vector<16x1xi1>, vector<16x1xf32>
    %39 = vector.shape_cast %38 : vector<16x1xf32> to vector<1x16x1xf32>
    %cst_10 = arith.constant dense<0.000000e+00> : vector<1xf32>
    %40 = vector.multi_reduction <add>, %39, %cst_10 [1, 2] : vector<1x16x1xf32> to vector<1xf32>
    %41 = vector.shape_cast %40 : vector<1xf32> to vector<1x1x1xf32>
    %42 = vector.extract %41[0, 0, 0] : f32 from vector<1x1x1xf32>
    %43 = vector.broadcast %42 : f32 to vector<1x1xf32>
    %44 = arith.addf %36, %43 : vector<1x1xf32>
    %c0_11 = arith.constant 0 : index
    %c0_12 = arith.constant 0 : index
    %45 = vector.load %arg4[%c0_11, %c0_12] : memref<1x1xf32, #tpu.memory_space<vmem>>, vector<1x1xf32>
    tpu.vector_store %arg4[%c0_11, %c0_12], %44 {strides = array<i32>} : memref<1x1xf32, #tpu.memory_space<vmem>>, vector<1x1xf32>,
    %c0_i32_13 = arith.constant 0 : i32
    %46 = arith.cmpi eq, %arg0, %c0_i32_13 : i32
    %47 = arith.extui %46 : i1 to i32
    %c0_i32_14 = arith.constant 0 : i32
    %48 = arith.cmpi ne, %47, %c0_i32_14 : i32
    scf.if %48 {
      %49 = tpu.iota {dimensions = array<i32: 0>} : vector<8x128xi32>
      %c0_i32_15 = arith.constant 0 : i32
      %50 = vector.broadcast %c0_i32_15 : i32 to vector<8x128xi32>
      %51 = arith.cmpi eq, %49, %50 : vector<8x128xi32>
      %52 = tpu.iota {dimensions = array<i32: 1>} : vector<8x128xi32>
      %c0_i32_16 = arith.constant 0 : i32
      %53 = vector.broadcast %c0_i32_16 : i32 to vector<8x128xi32>
      %54 = arith.cmpi eq, %52, %53 : vector<8x128xi32>
      %55 = arith.andi %51, %54 : vector<8x128xi1>
      %c0_17 = arith.constant 0 : index
      %c0_18 = arith.constant 0 : index
      %56 = vector.load %arg4[%c0_17, %c0_18] : memref<1x1xf32, #tpu.memory_space<vmem>>, vector<1x1xf32>
      %cst_19 = arith.constant 6.250000e-02 : f32
      %57 = vector.broadcast %cst_19 : f32 to vector<1x1xf32>
      %58 = arith.mulf %56, %57 : vector<1x1xf32>
      %cst_20 = arith.constant 0.000000e+00 : f32
      %59 = vector.shape_cast %58 : vector<1x1xf32> to vector<1x1xf32>
      %60 = vector.broadcast %59 : vector<1x1xf32> to vector<8x128xf32>
      %61 = vector.broadcast %cst_20 : f32 to vector<8x128xf32>
      %62 = arith.select %55, %60, %61 : vector<8x128xi1>, vector<8x128xf32>
      %c0_21 = arith.constant 0 : index
      %c0_22 = arith.constant 0 : index
      %63 = vector.load %arg3[%c0_21, %c0_22] : memref<8x128xf32, #tpu.memory_space<vmem>>, vector<8x128xf32>
      tpu.vector_store %arg3[%c0_21, %c0_22], %62 {strides = array<i32>} : memref<8x128xf32, #tpu.memory_space<vmem>>, vector<8x128xf32>,
    } else {
    }
    return
  }
  func.func @transform_0(%arg0: i32) -> (i32, i32) {
    %c0_i32 = arith.constant 0 : i32
    %c0_i32_0 = arith.constant 0 : i32
    return %arg0, %c0_i32 : i32, i32
  }
  func.func @transform_1(%arg0: i32) -> (i32, i32) {
    %c0_i32 = arith.constant 0 : i32
    %c0_i32_0 = arith.constant 0 : i32
    %c0_i32_1 = arith.constant 0 : i32
    return %c0_i32, %c0_i32_0 : i32, i32
  }
  func.func @transform_2(%arg0: i32) -> (i32, i32) {
    %c0_i32 = arith.constant 0 : i32
    %c0_i32_0 = arith.constant 0 : i32
    %c0_i32_1 = arith.constant 0 : i32
    return %c0_i32, %c0_i32_0 : i32, i32
  }
}

</mosaic_0001>

<bundles_post_ra>
// kernel: distance_penalty_loss.1
= control target key start
LH: loop header
LB: loop body
LE: loop exit
PB: predicated region body
PF: predicated region fallthrough
CT: control target
= control target key end

     0   :  { %vm24_vm0 = vcmask 179200   ;;  %vm43_vm1 = vcmask 1045504   ;;  %v275_v16 = vmov 22   ;;  %vm15_vm2 = vcmask 0   ;;  %s325_s0 = inlined_call_operand.vmem [shape: f32[16,23], index: 0, kind: input, shape index: {}]   ;;  %s326_s1 = inlined_call_operand.vmem [shape: f32[22,23], index: 1, kind: input, shape index: {}]   ;;  %s327_s2 = inlined_call_operand.vmem [shape: f32[8,128], index: 2, kind: output, shape index: {}]  }
   0x1   :  { %v17_v0 = vld [vmem:[%s325_s0] sm:$0xff]  ;;  %v18_v1 = vld [vmem:[%s325_s0 + $0x8] sm:$0xff]  ;;  %v23_v7 = vld [vmem:[%s326_s1 + $0x10] sm:$0x3f]  ;;  %260 = vset.pattern.permute.xlu1 %v275_v16  ;;  %259 = vset.pattern.permute.xlu0 %v275_v16  ;;  %v276_v25 = vmov 0.0   ;;  %v128_v26 = vlaneseq  ;;  %s277_s0 = smov 106  }
   0x2   :  { %v25_v2 = vsel %vm24_vm0, %v17_v0, -inf  ;;  %v28_v3 = vsel %vm24_vm0, %v18_v1, -inf  ;;  %v21_v4 = vld [vmem:[%s326_s1] sm:$0xff]  ;;  %v22_v5 = vld [vmem:[%s326_s1 + $0x8] sm:$0xff]  ;;  %v249_v17 = vtrunc.f32 %v17_v0  ;;  %v251_v22 = vtrunc.f32 %v18_v1  ;;  %16 = vst.msk [vmem:[#allocation2] sm:$0x1] %vm15_vm2, %v276_v25 }
   0x3   :  { %26 = vmax.xlane.f32.xlu0 %v25_v2  ;;  %v245_v6 = vpack.c.bf16 %v22_v5, %v21_v4  ;;  %v314_v27 = vand.u32 127, %v128_v26  ;;  %vm186_vm5 = vcmask 7168   ;;  %v278_v55 = vmov 0  }
   0x4   :  { %v250_v18 = vcvt.f32.s32 %v249_v17  ;;  %v252_v24 = vcvt.f32.s32 %v251_v22  ;;  %v167_v2 = vshrl.u32 %v128_v26, 7 }
   0x5   :  { %246 = vmatprep.subr.bf16.mxu0 %v245_v6  ;;  %vm207_vm7 = vcmp.eq.s32.totalorder %v314_v27, 0 }
   0x6   :  { %248 = vmatpush3.bf16.msra.mxu0 %v245_v6  ;;  %vm206_vm6 = vcmp.eq.s32.totalorder %v167_v2, 0 }
   0x7   :  { %29 = vmax.xlane.f32.xlu0 %v28_v3  ;;  %240 = vmatprep.subr.msk.mxu0 %vm43_vm1, %v23_v7  ;;  %v214_v3 = vsub.s32 0, %v167_v2  ;;  %vm208_vm8 = vmand %vm206_vm6, %vm207_vm7 }
   0x9   :  { %v175_v63 = vld [vmem:[#allocation2] sm:$0x1] }
   0xa   :  { %241 = vmatpush3.msk.msra.mxu0 %vm43_vm1, %v23_v7 }
  0x1d   :  { %131 = vperm.xlu0 %259, %v250_v18  }
  0x21   :  { %262 = vset.pattern.permute.xlu0 %v278_v55 }
  0x90   :  { %v27_v8 = vpop.xlane.xlu0 %26 }
  0x91   :  { %v31_v9 = vsub.f32 %v17_v0, %v27_v8 }
  0x93   :  { %v33_v10 = vmul.f32 1.442695, %v31_v9 }
  0x94   :  { %v30_v11 = vpop.xlane.xlu0 %29 }
  0x95   :  { %263 = vpow2.f32 %v33_v10  ;;  %v32_v12 = vsub.f32 %v18_v1, %v30_v11 }
  0x97   :  { %v35_v13 = vmul.f32 1.442695, %v32_v12 }
  0x99   :  { %265 = vpow2.f32 %v35_v13 }
  0x9c   :  { %v132_v29 = vpop.permute.xlu0 %131 }
  0x9d   :  { %vm136_vm3 = vcmp.eq.s32.totalorder %v314_v27, %v132_v29 }
  0x9e   :  { %v229_v33 = vsel %vm136_vm3, 1.0, %v276_v25 }
  0x9f   :  { %v264_v14 = vpop.eup %263 }
  0xa0   :  { %242 = vmatprep.mubr.msk.f32.mxu0 %vm24_vm0, %v264_v14 }
  0xa3   :  { %v266_v15 = vpop.eup %265 }
  0xa4   :  { %243 = vmatmul.mubr.msk.f32.vlgmr.msra.gmra.mrb[0].mxu0 %vm24_vm0, %v266_v15 }
 0x177   :  { %v244_v19 = vpop.f32.mrb[0].mxu0 }
 0x178   :  { %267 = vrcp.f32 %v244_v19  ;;  %v113_v20 = vpop.f32.mrb[1].mxu0 }
 0x179   :  { %269 = vrcp.f32 %v113_v20 }
 0x17a   :  { %271 = vlog2.f32 %v113_v20 }
 0x17b   :  { %273 = vlog2.f32 %v244_v19 }
 0x182   :  { %v268_v21 = vpop.eup %267 }
 0x183   :  { %149 = vperm.xlu1 %260, %v268_v21   ;;  %v270_v23 = vpop.eup %269 }
 0x184   :  { %v272_v42 = vpop.eup %271 }
 0x185   :  { %v125_v43 = vmul.f32 0.6931472, %v272_v42  ;;  %v274_v44 = vpop.eup %273 }
 0x186   :  { %v127_v47 = vmul.f32 0.6931472, %v274_v44 }
 0x187   :  { %144 = vperm.xlu1 %260, %v270_v23  }
 0x18b   :  { %134 = vperm.xlu1 %260, %v252_v24  }
 0x18f   :  { %261 = vset.pattern.permute.xlu1 %v278_v55 }
 0x202   :  { %v150_v28 = vpop.permute.xlu1 %149 }
 0x203   :  { %v153_v31 = vmul.f32 %v244_v19, %v150_v28 }
 0x205   :  { %v155_v36 = vsub.f32 %v153_v31, %v32_v12 }
 0x206   :  { %v145_v30 = vpop.permute.xlu1 %144 }
 0x207   :  { %v152_v32 = vmul.f32 %v145_v30, %v113_v20 }
 0x209   :  { %v154_v34 = vsub.f32 %v152_v32, %v31_v9 }
 0x20a   :  { %v135_v35 = vpop.permute.xlu1 %134 }
 0x20b   :  { %vm137_vm4 = vcmp.eq.s32.totalorder %v314_v27, %v135_v35  ;;  %v156_v37 = vmul.f32 %v229_v33, %v154_v34 }
 0x20c   :  { %v230_v38 = vsel %vm137_vm4, 1.0, %v276_v25 }
 0x20d   :  { %v158_v39 = vsel %vm24_vm0, %v156_v37, 0.0  ;;  %v157_v40 = vmul.f32 %v230_v38, %v155_v36 }
 0x20e   :  { %159 = vadd.xlane.f32.xlu1 %v158_v39 }
 0x20f   :  { %v161_v41 = vsel %vm24_vm0, %v157_v40, 0.0 }
 0x212   :  { %162 = vadd.xlane.f32.xlu1 %v161_v41 }
 0x29b   :  { %v160_v45 = vpop.xlane.xlu1 %159 }
 0x29c   :  { %v164_v46 = vadd.f32 %v160_v45, %v125_v43 }
 0x29e   :  { %180 = vrot.lane.b32.xlu0 %v164_v46, %s277_s0 }
 0x29f   :  { %v163_v48 = vpop.xlane.xlu1 %162 }
 0x2a0   :  { %v165_v49 = vadd.f32 %v163_v48, %v127_v47 }
 0x2a2   :  { %182 = vrot.lane.b32.xlu1 %v165_v49, %s277_s0 }
 0x310   :  { %v181_v50 = vpop.permute.xlu0 %180 }
 0x311   :  { %v187_v52 = vsel %vm186_vm5, %v181_v50, 0.0 }
 0x314   :  { %v183_v51 = vpop.permute.xlu1 %182 }
 0x315   :  { %v188_v53 = vsel %vm186_vm5, %v183_v51, 0.0 }
 0x316   :  { %v189_v54 = vadd.f32 %v188_v53, %v187_v52 }
 0x318   :  { %190 = vadd.xlane.f32.xlu0 %v189_v54 }
 0x3a5   :  { %v191_v56 = vpop.xlane.xlu0 %190 }
 0x3a6   :  { %v192_v57 = vrot.slane %v191_v56, 4 }
 0x3a8   :  { %v193_v58 = vadd.f32 %v192_v57, %v191_v56 }
 0x3aa   :  { %v194_v59 = vrot.slane %v193_v58, 2 }
 0x3ac   :  { %v195_v60 = vadd.f32 %v194_v59, %v193_v58 }
 0x3ae   :  { %v196_v61 = vrot.slane %v195_v60, 1 }
 0x3b0   :  { %v197_v62 = vadd.f32 %v196_v61, %v195_v60 }
 0x3b2   :  { %253 = vpush %v197_v62 }
 0x3e3   :  { %s254_s1 = spop %253 }
 0x3e4   :  { %v199_v0 = vstv %s254_s1 }
 0x3e5   :  { %v200_v1 = vadd.f32 %v199_v0, %v175_v63 }
 0x3e7   :  { %202 = vst.msk [vmem:[#allocation2] sm:$0x1] %vm15_vm2, %v200_v1 }
 0x3ee   :  { %v209_v4 = vld [vmem:[#allocation2] sm:$0x1] }
 0x3ef   :  { %v210_v5 = vmul.f32 0.0625, %v209_v4 }
 0x3f1   :  { %v215_v6 = vrot.slane %v210_v5, %v214_v3 }
 0x3f3   :  { %217 = vperm.xlu1 %261, %v215_v6  }
 0x472   :  { %v218_v7 = vpop.permute.xlu1 %217 }
 0x473   :  { %v220_v8 = vsel %vm208_vm8, %v218_v7, 0.0 }
 0x474   :  { %221 = vst [vmem:[%s327_s2] sm:$0xff] %v220_v8 }

</bundles_post_ra>
